<compile_context>
chip_gen: v7x
topology: tpu7x:2x2x1
jax: 0.10.0
libtpu: 0.0.40
codegen_flags: <defaults>
</compile_context>

<pallas_src>
import math
import jax
import jax.numpy as jnp
from jax.experimental import pallas as pl
from jax.experimental.pallas import tpu as pltpu


def _sigmoid(z):
    # One tanh EUP push per element instead of exp + add + reciprocal.
    return 0.5 * (jnp.tanh(0.5 * z) + 1.0)


def ae_kernel(x_ref,
              wg_ref, bg_ref,
              w1_ref, b1_ref,
              w2_ref, b2_ref,
              wd1_ref, bd1_ref,
              wd2_ref, bd2_ref,
              wh_ref, bh_ref,
              out_ref):
    """Whole autoencoder MLP for one batch tile; all weights resident in VMEM."""
    def lin(h, w_ref, b_ref):
        return jnp.dot(h, w_ref[...], preferred_element_type=jnp.float32) + b_ref[...]

    h = _sigmoid(lin(x_ref[...], wg_ref, bg_ref))   # g    + Sigmoid
    h = jnp.tanh(lin(h, w1_ref, b1_ref))            # enc1 + Tanh
    h = jnp.tanh(lin(h, w2_ref, b2_ref))            # enc2 + Tanh
    h = jnp.tanh(lin(h, wd1_ref, bd1_ref))          # dec1 + Tanh
    h = jnp.tanh(lin(h, wd2_ref, bd2_ref))          # dec2 + Tanh
    out_ref[...] = _sigmoid(lin(h, wh_ref, bh_ref)).astype(out_ref.dtype)


def _rup(n, m):
    return ((n + m - 1) // m) * m


def _pad2(a, rows, cols):
    r, c = a.shape
    if r == rows and c == cols:
        return a
    return jnp.pad(a, ((0, rows - r), (0, cols - c)))


def autoencoder_forward(x, params, *, max_tile_b=256):
    """x: (B, num_question) float32. params: dict of (in,out) weights / (1,out) biases."""
    B, NQ = x.shape
    I = params["wg"].shape[1]
    J = params["w1"].shape[1]
    K = params["w2"].shape[1]

    # Pad every feature dim up to a multiple of 128 (lane-dense activations,
    # MXU-aligned matmuls, unmasked output stores). Zero padding is exact.
    NQp, Ip, Jp, Kp = (_rup(d, 128) for d in (NQ, I, J, K))

    wg  = _pad2(params["wg"],  NQp, Ip);  bg  = _pad2(params["bg"],  1, Ip)
    w1  = _pad2(params["w1"],  Ip,  Jp);  b1  = _pad2(params["b1"],  1, Jp)
    w2  = _pad2(params["w2"],  Jp,  Kp);  b2  = _pad2(params["b2"],  1, Kp)
    wd1 = _pad2(params["wd1"], Kp,  Jp);  bd1 = _pad2(params["bd1"], 1, Jp)
    wd2 = _pad2(params["wd2"], Jp,  Ip);  bd2 = _pad2(params["bd2"], 1, Ip)
    wh  = _pad2(params["wh"],  Ip,  NQp); bh  = _pad2(params["bh"],  1, NQp)
    ordered = [wg, bg, w1, b1, w2, b2, wd1, bd1, wd2, bd2, wh, bh]

    # Batch tiling: the whole batch is one tile when small (no multi-step grid
    # overhead); otherwise <=max_tile_b-row tiles (>=128 rows fills MXU rows).
    Bp = _rup(B, 8)
    tile_b = Bp if Bp <= max_tile_b else max_tile_b
    Bp = _rup(Bp, tile_b)
    xp = _pad2(x, Bp, NQp)

    # Weights/biases are grid-invariant full-array blocks (index_map -> (0,0)).
    x_spec = pl.BlockSpec((tile_b, NQp), lambda b: (b, 0))
    w_specs = [pl.BlockSpec(p.shape, lambda b: (0, 0)) for p in ordered]
    out_spec = pl.BlockSpec((tile_b, NQp), lambda b: (b, 0))

    out = pl.pallas_call(
        ae_kernel,
        out_shape=jax.ShapeDtypeStruct((Bp, NQp), jnp.float32),
        grid_spec=pltpu.PrefetchScalarGridSpec(
            num_scalar_prefetch=0,
            grid=(Bp // tile_b,),
            in_specs=[x_spec] + w_specs,
            out_specs=out_spec,
        ),
        compiler_params=pltpu.CompilerParams(
            dimension_semantics=("parallel",),
        ),
    )(xp, *ordered)

    return out[:B, :NQ]


def init_params(key, num_question, i=32, j=96, k=48):
    """Deterministic init mimicking the PyTorch module's __init__ (small dims)."""
    keys = jax.random.split(key, 12)

    def kaiming_uniform(kk, fan_in, fan_out):
        # nn.init.kaiming_uniform_(nonlinearity='sigmoid') -> gain=1
        bound = math.sqrt(3.0) / math.sqrt(fan_in)
        return jax.random.uniform(kk, (fan_in, fan_out), jnp.float32, -bound, bound)

    def default_linear(kk, fan_in, fan_out):
        # PyTorch default: U(-1/sqrt(fan_in), 1/sqrt(fan_in))
        bound = 1.0 / math.sqrt(fan_in)
        return jax.random.uniform(kk, (fan_in, fan_out), jnp.float32, -bound, bound)

    def bias(kk, fan_in, fan_out):
        bound = 1.0 / math.sqrt(fan_in)
        return jax.random.uniform(kk, (1, fan_out), jnp.float32, -bound, bound)

    return {
        "wg":  kaiming_uniform(keys[0], num_question, i), "bg":  bias(keys[1], num_question, i),
        "w1":  default_linear(keys[2], i, j),             "b1":  bias(keys[3], i, j),
        "w2":  default_linear(keys[4], j, k),             "b2":  bias(keys[5], j, k),
        "wd1": default_linear(keys[6], k, j),             "bd1": bias(keys[7], k, j),
        "wd2": default_linear(keys[8], j, i),             "bd2": bias(keys[9], j, i),
        "wh":  default_linear(keys[10], i, num_question), "bh":  bias(keys[11], i, num_question),
    }


def reference_forward(x, p):
    h = jax.nn.sigmoid(x @ p["wg"] + p["bg"])
    h = jnp.tanh(h @ p["w1"] + p["b1"])
    h = jnp.tanh(h @ p["w2"] + p["b2"])
    h = jnp.tanh(h @ p["wd1"] + p["bd1"])
    h = jnp.tanh(h @ p["wd2"] + p["bd2"])
    return jax.nn.sigmoid(h @ p["wh"] + p["bh"])


if __name__ == "__main__":
    key = jax.random.PRNGKey(0)
    kx, kp = jax.random.split(key)

    B, NQ = 16, 64           # small shapes: batch=16, num_question=64
    I, J, K = 32, 96, 48     # scaled-down (i, j, k) from the module defaults

    x = jax.random.uniform(kx, (B, NQ), jnp.float32)   # "user vectors" in [0,1)
    params = init_params(kp, NQ, i=I, j=J, k=K)

    out = autoencoder_forward(x, params)
    out = jax.block_until_ready(out)

    ref = reference_forward(x, params)
    assert out.shape == (B, NQ)
    assert jnp.allclose(out, ref, atol=5e-5, rtol=5e-5)

    print("KERNEL_OK")
</pallas_src>

<mosaic_0001>
module attributes {stable_mosaic.version = 11 : i64} {
  func.func @ae_kernel(%arg0: i32, %arg1: memref<16x128xf32, #tpu.memory_space<vmem>>, %arg2: memref<128x128xf32, #tpu.memory_space<vmem>>, %arg3: memref<1x128xf32, #tpu.memory_space<vmem>>, %arg4: memref<128x128xf32, #tpu.memory_space<vmem>>, %arg5: memref<1x128xf32, #tpu.memory_space<vmem>>, %arg6: memref<128x128xf32, #tpu.memory_space<vmem>>, %arg7: memref<1x128xf32, #tpu.memory_space<vmem>>, %arg8: memref<128x128xf32, #tpu.memory_space<vmem>>, %arg9: memref<1x128xf32, #tpu.memory_space<vmem>>, %arg10: memref<128x128xf32, #tpu.memory_space<vmem>>, %arg11: memref<1x128xf32, #tpu.memory_space<vmem>>, %arg12: memref<128x128xf32, #tpu.memory_space<vmem>>, %arg13: memref<1x128xf32, #tpu.memory_space<vmem>>, %arg14: memref<16x128xf32, #tpu.memory_space<vmem>>) attributes {dimension_semantics = [#tpu.dimension_semantics<parallel>], iteration_bounds = array<i64: 1>, scalar_prefetch = 0 : i64, scratch_operands = 0 : i64, tpu.core_type = #tpu.core_type<tc>, window_params = [{transform_indices = @transform_0, window_bounds = array<i64: 16, 128>}, {pipeline_mode = #tpu.pipeline_mode<synchronous>, transform_indices = @transform_1, window_bounds = array<i64: 128, 128>}, {pipeline_mode = #tpu.pipeline_mode<synchronous>, transform_indices = @transform_2, window_bounds = array<i64: 1, 128>}, {pipeline_mode = #tpu.pipeline_mode<synchronous>, transform_indices = @transform_3, window_bounds = array<i64: 128, 128>}, {pipeline_mode = #tpu.pipeline_mode<synchronous>, transform_indices = @transform_4, window_bounds = array<i64: 1, 128>}, {pipeline_mode = #tpu.pipeline_mode<synchronous>, transform_indices = @transform_5, window_bounds = array<i64: 128, 128>}, {pipeline_mode = #tpu.pipeline_mode<synchronous>, transform_indices = @transform_6, window_bounds = array<i64: 1, 128>}, {pipeline_mode = #tpu.pipeline_mode<synchronous>, transform_indices = @transform_7, window_bounds = array<i64: 128, 128>}, {pipeline_mode = #tpu.pipeline_mode<synchronous>, transform_indices = @transform_8, window_bounds = array<i64: 1, 128>}, {pipeline_mode = #tpu.pipeline_mode<synchronous>, transform_indices = @transform_9, window_bounds = array<i64: 128, 128>}, {pipeline_mode = #tpu.pipeline_mode<synchronous>, transform_indices = @transform_10, window_bounds = array<i64: 1, 128>}, {pipeline_mode = #tpu.pipeline_mode<synchronous>, transform_indices = @transform_11, window_bounds = array<i64: 128, 128>}, {pipeline_mode = #tpu.pipeline_mode<synchronous>, transform_indices = @transform_12, window_bounds = array<i64: 1, 128>}, {transform_indices = @transform_13, window_bounds = array<i64: 16, 128>}]} {
    %c0 = arith.constant 0 : index
    %c0_0 = arith.constant 0 : index
    %0 = vector.load %arg1[%c0, %c0_0] : memref<16x128xf32, #tpu.memory_space<vmem>>, vector<16x128xf32>
    %c0_1 = arith.constant 0 : index
    %c0_2 = arith.constant 0 : index
    %1 = vector.load %arg2[%c0_1, %c0_2] : memref<128x128xf32, #tpu.memory_space<vmem>>, vector<128x128xf32>
    %cst = arith.constant dense<0.000000e+00> : vector<16x128xf32>
    %2 = tpu.matmul %0, %1, %cst {dimension_numbers = #tpu.dot_dimension_numbers<[1], [0], [0], [1], [0, 0, 1, 1], [], []>} : vector<16x128xf32>, vector<128x128xf32>, vector<16x128xf32> -> vector<16x128xf32>
    %c0_3 = arith.constant 0 : index
    %c0_4 = arith.constant 0 : index
    %3 = vector.load %arg3[%c0_3, %c0_4] : memref<1x128xf32, #tpu.memory_space<vmem>>, vector<1x128xf32>
    %4 = vector.broadcast %3 : vector<1x128xf32> to vector<16x128xf32>
    %5 = arith.addf %2, %4 : vector<16x128xf32>
    %cst_5 = arith.constant 5.000000e-01 : f32
    %6 = vector.broadcast %cst_5 : f32 to vector<16x128xf32>
    %7 = arith.mulf %6, %5 : vector<16x128xf32>
    %8 = math.tanh %7 : vector<16x128xf32>
    %cst_6 = arith.constant 1.000000e+00 : f32
    %9 = vector.broadcast %cst_6 : f32 to vector<16x128xf32>
    %10 = arith.addf %8, %9 : vector<16x128xf32>
    %cst_7 = arith.constant 5.000000e-01 : f32
    %11 = vector.broadcast %cst_7 : f32 to vector<16x128xf32>
    %12 = arith.mulf %11, %10 : vector<16x128xf32>
    %c0_8 = arith.constant 0 : index
    %c0_9 = arith.constant 0 : index
    %13 = vector.load %arg4[%c0_8, %c0_9] : memref<128x128xf32, #tpu.memory_space<vmem>>, vector<128x128xf32>
    %cst_10 = arith.constant dense<0.000000e+00> : vector<16x128xf32>
    %14 = tpu.matmul %12, %13, %cst_10 {dimension_numbers = #tpu.dot_dimension_numbers<[1], [0], [0], [1], [0, 0, 1, 1], [], []>} : vector<16x128xf32>, vector<128x128xf32>, vector<16x128xf32> -> vector<16x128xf32>
    %c0_11 = arith.constant 0 : index
    %c0_12 = arith.constant 0 : index
    %15 = vector.load %arg5[%c0_11, %c0_12] : memref<1x128xf32, #tpu.memory_space<vmem>>, vector<1x128xf32>
    %16 = vector.broadcast %15 : vector<1x128xf32> to vector<16x128xf32>
    %17 = arith.addf %14, %16 : vector<16x128xf32>
    %18 = math.tanh %17 : vector<16x128xf32>
    %c0_13 = arith.constant 0 : index
    %c0_14 = arith.constant 0 : index
    %19 = vector.load %arg6[%c0_13, %c0_14] : memref<128x128xf32, #tpu.memory_space<vmem>>, vector<128x128xf32>
    %cst_15 = arith.constant dense<0.000000e+00> : vector<16x128xf32>
    %20 = tpu.matmul %18, %19, %cst_15 {dimension_numbers = #tpu.dot_dimension_numbers<[1], [0], [0], [1], [0, 0, 1, 1], [], []>} : vector<16x128xf32>, vector<128x128xf32>, vector<16x128xf32> -> vector<16x128xf32>
    %c0_16 = arith.constant 0 : index
    %c0_17 = arith.constant 0 : index
    %21 = vector.load %arg7[%c0_16, %c0_17] : memref<1x128xf32, #tpu.memory_space<vmem>>, vector<1x128xf32>
    %22 = vector.broadcast %21 : vector<1x128xf32> to vector<16x128xf32>
    %23 = arith.addf %20, %22 : vector<16x128xf32>
    %24 = math.tanh %23 : vector<16x128xf32>
    %c0_18 = arith.constant 0 : index
    %c0_19 = arith.constant 0 : index
    %25 = vector.load %arg8[%c0_18, %c0_19] : memref<128x128xf32, #tpu.memory_space<vmem>>, vector<128x128xf32>
    %cst_20 = arith.constant dense<0.000000e+00> : vector<16x128xf32>
    %26 = tpu.matmul %24, %25, %cst_20 {dimension_numbers = #tpu.dot_dimension_numbers<[1], [0], [0], [1], [0, 0, 1, 1], [], []>} : vector<16x128xf32>, vector<128x128xf32>, vector<16x128xf32> -> vector<16x128xf32>
    %c0_21 = arith.constant 0 : index
    %c0_22 = arith.constant 0 : index
    %27 = vector.load %arg9[%c0_21, %c0_22] : memref<1x128xf32, #tpu.memory_space<vmem>>, vector<1x128xf32>
    %28 = vector.broadcast %27 : vector<1x128xf32> to vector<16x128xf32>
    %29 = arith.addf %26, %28 : vector<16x128xf32>
    %30 = math.tanh %29 : vector<16x128xf32>
    %c0_23 = arith.constant 0 : index
    %c0_24 = arith.constant 0 : index
    %31 = vector.load %arg10[%c0_23, %c0_24] : memref<128x128xf32, #tpu.memory_space<vmem>>, vector<128x128xf32>
    %cst_25 = arith.constant dense<0.000000e+00> : vector<16x128xf32>
    %32 = tpu.matmul %30, %31, %cst_25 {dimension_numbers = #tpu.dot_dimension_numbers<[1], [0], [0], [1], [0, 0, 1, 1], [], []>} : vector<16x128xf32>, vector<128x128xf32>, vector<16x128xf32> -> vector<16x128xf32>
    %c0_26 = arith.constant 0 : index
    %c0_27 = arith.constant 0 : index
    %33 = vector.load %arg11[%c0_26, %c0_27] : memref<1x128xf32, #tpu.memory_space<vmem>>, vector<1x128xf32>
    %34 = vector.broadcast %33 : vector<1x128xf32> to vector<16x128xf32>
    %35 = arith.addf %32, %34 : vector<16x128xf32>
    %36 = math.tanh %35 : vector<16x128xf32>
    %c0_28 = arith.constant 0 : index
    %c0_29 = arith.constant 0 : index
    %37 = vector.load %arg12[%c0_28, %c0_29] : memref<128x128xf32, #tpu.memory_space<vmem>>, vector<128x128xf32>
    %cst_30 = arith.constant dense<0.000000e+00> : vector<16x128xf32>
    %38 = tpu.matmul %36, %37, %cst_30 {dimension_numbers = #tpu.dot_dimension_numbers<[1], [0], [0], [1], [0, 0, 1, 1], [], []>} : vector<16x128xf32>, vector<128x128xf32>, vector<16x128xf32> -> vector<16x128xf32>
    %c0_31 = arith.constant 0 : index
    %c0_32 = arith.constant 0 : index
    %39 = vector.load %arg13[%c0_31, %c0_32] : memref<1x128xf32, #tpu.memory_space<vmem>>, vector<1x128xf32>
    %40 = vector.broadcast %39 : vector<1x128xf32> to vector<16x128xf32>
    %41 = arith.addf %38, %40 : vector<16x128xf32>
    %cst_33 = arith.constant 5.000000e-01 : f32
    %42 = vector.broadcast %cst_33 : f32 to vector<16x128xf32>
    %43 = arith.mulf %42, %41 : vector<16x128xf32>
    %44 = math.tanh %43 : vector<16x128xf32>
    %cst_34 = arith.constant 1.000000e+00 : f32
    %45 = vector.broadcast %cst_34 : f32 to vector<16x128xf32>
    %46 = arith.addf %44, %45 : vector<16x128xf32>
    %cst_35 = arith.constant 5.000000e-01 : f32
    %47 = vector.broadcast %cst_35 : f32 to vector<16x128xf32>
    %48 = arith.mulf %47, %46 : vector<16x128xf32>
    %c0_36 = arith.constant 0 : index
    %c0_37 = arith.constant 0 : index
    %49 = vector.load %arg14[%c0_36, %c0_37] : memref<16x128xf32, #tpu.memory_space<vmem>>, vector<16x128xf32>
    tpu.vector_store %arg14[%c0_36, %c0_37], %48 {strides = array<i32>} : memref<16x128xf32, #tpu.memory_space<vmem>>, vector<16x128xf32>,
    return
  }
  func.func @transform_0(%arg0: i32) -> (i32, i32) {
    %c0_i32 = arith.constant 0 : i32
    %c0_i32_0 = arith.constant 0 : i32
    return %arg0, %c0_i32 : i32, i32
  }
  func.func @transform_1(%arg0: i32) -> (i32, i32) {
    %c0_i32 = arith.constant 0 : i32
    %c0_i32_0 = arith.constant 0 : i32
    %c0_i32_1 = arith.constant 0 : i32
    return %c0_i32, %c0_i32_0 : i32, i32
  }
  func.func @transform_2(%arg0: i32) -> (i32, i32) {
    %c0_i32 = arith.constant 0 : i32
    %c0_i32_0 = arith.constant 0 : i32
    %c0_i32_1 = arith.constant 0 : i32
    return %c0_i32, %c0_i32_0 : i32, i32
  }
  func.func @transform_3(%arg0: i32) -> (i32, i32) {
    %c0_i32 = arith.constant 0 : i32
    %c0_i32_0 = arith.constant 0 : i32
    %c0_i32_1 = arith.constant 0 : i32
    return %c0_i32, %c0_i32_0 : i32, i32
  }
  func.func @transform_4(%arg0: i32) -> (i32, i32) {
    %c0_i32 = arith.constant 0 : i32
    %c0_i32_0 = arith.constant 0 : i32
    %c0_i32_1 = arith.constant 0 : i32
    return %c0_i32, %c0_i32_0 : i32, i32
  }
  func.func @transform_5(%arg0: i32) -> (i32, i32) {
    %c0_i32 = arith.constant 0 : i32
    %c0_i32_0 = arith.constant 0 : i32
    %c0_i32_1 = arith.constant 0 : i32
    return %c0_i32, %c0_i32_0 : i32, i32
  }
  func.func @transform_6(%arg0: i32) -> (i32, i32) {
    %c0_i32 = arith.constant 0 : i32
    %c0_i32_0 = arith.constant 0 : i32
    %c0_i32_1 = arith.constant 0 : i32
    return %c0_i32, %c0_i32_0 : i32, i32
  }
  func.func @transform_7(%arg0: i32) -> (i32, i32) {
    %c0_i32 = arith.constant 0 : i32
    %c0_i32_0 = arith.constant 0 : i32
    %c0_i32_1 = arith.constant 0 : i32
    return %c0_i32, %c0_i32_0 : i32, i32
  }
  func.func @transform_8(%arg0: i32) -> (i32, i32) {
    %c0_i32 = arith.constant 0 : i32
    %c0_i32_0 = arith.constant 0 : i32
    %c0_i32_1 = arith.constant 0 : i32
    return %c0_i32, %c0_i32_0 : i32, i32
  }
  func.func @transform_9(%arg0: i32) -> (i32, i32) {
    %c0_i32 = arith.constant 0 : i32
    %c0_i32_0 = arith.constant 0 : i32
    %c0_i32_1 = arith.constant 0 : i32
    return %c0_i32, %c0_i32_0 : i32, i32
  }
  func.func @transform_10(%arg0: i32) -> (i32, i32) {
    %c0_i32 = arith.constant 0 : i32
    %c0_i32_0 = arith.constant 0 : i32
    %c0_i32_1 = arith.constant 0 : i32
    return %c0_i32, %c0_i32_0 : i32, i32
  }
  func.func @transform_11(%arg0: i32) -> (i32, i32) {
    %c0_i32 = arith.constant 0 : i32
    %c0_i32_0 = arith.constant 0 : i32
    %c0_i32_1 = arith.constant 0 : i32
    return %c0_i32, %c0_i32_0 : i32, i32
  }
  func.func @transform_12(%arg0: i32) -> (i32, i32) {
    %c0_i32 = arith.constant 0 : i32
    %c0_i32_0 = arith.constant 0 : i32
    %c0_i32_1 = arith.constant 0 : i32
    return %c0_i32, %c0_i32_0 : i32, i32
  }
  func.func @transform_13(%arg0: i32) -> (i32, i32) {
    %c0_i32 = arith.constant 0 : i32
    %c0_i32_0 = arith.constant 0 : i32
    return %arg0, %c0_i32 : i32, i32
  }
}

</mosaic_0001>

<bundles_post_ra>
// kernel: tpu_custom_call.1
= control target key start
LH: loop header
LB: loop body
LE: loop exit
PB: predicated region body
PF: predicated region fallthrough
CT: control target
= control target key end

     0   :  { %18 = vsyncpa [#allocation3], 0  ;;  %s1751_s0 = inlined_call_operand.hbm [shape: f32[16,128], index: 0, kind: input, shape index: {}]   ;;  %s1752_s1 = inlined_call_operand.hbm [shape: f32[128,128], index: 1, kind: input, shape index: {}]   ;;  %s1753_s2 = inlined_call_operand.vmem [shape: f32[1,128], index: 2, kind: input, shape index: {}]   ;;  %s1754_s3 = inlined_call_operand.hbm [shape: f32[128,128], index: 3, kind: input, shape index: {}]   ;;  %s1755_s4 = inlined_call_operand.vmem [shape: f32[1,128], index: 4, kind: input, shape index: {}]   ;;  %s1756_s5 = inlined_call_operand.hbm [shape: f32[128,128], index: 5, kind: input, shape index: {}]   ;;  %s1757_s6 = inlined_call_operand.vmem [shape: f32[1,128], index: 6, kind: input, shape index: {}]   ;;  %s1758_s7 = inlined_call_operand.hbm [shape: f32[128,128], index: 7, kind: input, shape index: {}]   ;;  %s1759_s8 = inlined_call_operand.vmem [shape: f32[1,128], index: 8, kind: input, shape index: {}]   ;;  %s1760_s9 = inlined_call_operand.hbm [shape: f32[128,128], index: 9, kind: input, shape index: {}]   ;;  %s1761_s10 = inlined_call_operand.vmem [shape: f32[1,128], index: 10, kind: input, shape index: {}]   ;;  %s1762_s11 = inlined_call_operand.hbm [shape: f32[128,128], index: 11, kind: input, shape index: {}]   ;;  %s1763_s12 = inlined_call_operand.vmem [shape: f32[1,128], index: 12, kind: input, shape index: {}]   ;;  %s1764_s13 = inlined_call_operand.hbm [shape: f32[16,128], index: 13, kind: output, shape index: {}]  }
   0x1   :  { %19 = vsyncpa [#allocation6], 0 }
   0x2   :  { %20 = vsyncpa [#allocation9], 0 }
   0x3   :  { %21 = vsyncpa [#allocation12], 0 }
   0x4   :  { %22 = vsyncpa [#allocation4], 0  ;;  %s1512_s25 = smov [#allocation5]   ;;  %s1513_s27 = smov [#allocation8]  }
   0x5   :  { %s40_s26 = sshll.u32 %s1512_s25, 4  ;;  %s68_s28 = sshll.u32 %s1513_s27, 4  ;;  %s41_s26 = int_to_ptr.vmem [resolvable:$true] %s40_s26  ;;  %s1592_s28 = int_to_ptr.vmem [resolvable:$true] %s68_s28 }
   0x6   :  { %s1326_s14 = scalar_lea.hbm %s1752_s1, 2048 }
   0x7   :  { %p1327_p0 = scmp.ne.s32.totalorder %s1752_s1, %s1326_s14  ;;  %p1330_p1 = scmp.lt.u32.totalorder %s1326_s14, %s1752_s1 }
   0x9   :  { %p1332_p2 = pnand %p1330_p1, %p1327_p0 }
   0xb   :  { %1335 = shalt.err (!%p1332_p2)
}
   0xc   :  { %s1336_s19 = scalar_lea.vmem %s41_s26, 2048  ;;  %p1341_p4 = scmp.lt.s32.totalorder %s41_s26, %s41_s26 }
   0xd   :  { %p1337_p3 = scmp.ne.s32.totalorder %s41_s26, %s1336_s19  ;;  %p1342_p5 = scmp.lt.s32.totalorder %s1336_s19, %s1336_s19 }
   0xf   :  { %p1343_p6 = por %p1342_p5, %p1341_p4 }
  0x11   :  { %p1344_p7 = pnand %p1343_p6, %p1337_p3 }
  0x13   :  { %1347 = shalt.err (!%p1344_p7)
}
  0x14   :  { %s1514_s20 = smov 128   ;;  %s1515_s21 = smov 8  }
  0x15   :  { %46 = dma.hbm_to_vmem [thread:$0]  %s1752_s1, 2048, %s41_s26, [#allocation6], %s1514_s20, %s1514_s20, %s1515_s21  }
  0x16   :  { %s1348_s27 = scalar_lea.hbm %s1756_s5, 2048 }
  0x17   :  { %p1349_p8 = scmp.ne.s32.totalorder %s1756_s5, %s1348_s27  ;;  %p1352_p9 = scmp.lt.u32.totalorder %s1348_s27, %s1756_s5 }
  0x19   :  { %p1354_p10 = pnand %p1352_p9, %p1349_p8 }
  0x1b   :  { %1357 = shalt.err (!%p1354_p10)
}
  0x1c   :  { %s1358_s16 = scalar_lea.vmem %s1592_s28, 2048  ;;  %p1363_p12 = scmp.lt.s32.totalorder %s1592_s28, %s1592_s28 }
  0x1d   :  { %p1359_p11 = scmp.ne.s32.totalorder %s1592_s28, %s1358_s16  ;;  %p1364_p13 = scmp.lt.s32.totalorder %s1358_s16, %s1358_s16 }
  0x1f   :  { %p1365_p0 = por %p1364_p13, %p1363_p12 }
  0x21   :  { %p1366_p1 = pnand %p1365_p0, %p1359_p11 }
  0x23   :  { %1369 = shalt.err (!%p1366_p1)
}
  0x24   :  { %74 = dma.hbm_to_vmem [thread:$0]  %s1756_s5, 2048, %s1592_s28, [#allocation9], %s1514_s20, %s1514_s20, %s1515_s21  }
  0x25   :  { %s1516_s17 = smov [#allocation11]   ;;  %s1517_s19 = smov [#allocation2]  }
  0x26   :  { %s96_s18 = sshll.u32 %s1516_s17, 4  ;;  %s28_s22 = sshll.u32 %s1517_s19, 4  ;;  %s97_s18 = int_to_ptr.vmem [resolvable:$true] %s96_s18  ;;  %s1629_s22 = int_to_ptr.vmem [resolvable:$true] %s28_s22 }
  0x27   :  { %s1370_s25 = scalar_lea.hbm %s1760_s9, 2048 }
  0x28   :  { %p1371_p2 = scmp.ne.s32.totalorder %s1760_s9, %s1370_s25  ;;  %p1374_p3 = scmp.lt.u32.totalorder %s1370_s25, %s1760_s9 }
  0x2a   :  { %p1376_p4 = pnand %p1374_p3, %p1371_p2 }
  0x2c   :  { %1379 = shalt.err (!%p1376_p4)
}
  0x2d   :  { %s1380_s5 = scalar_lea.vmem %s97_s18, 2048  ;;  %p1385_p6 = scmp.lt.s32.totalorder %s97_s18, %s97_s18 }
  0x2e   :  { %p1381_p5 = scmp.ne.s32.totalorder %s97_s18, %s1380_s5  ;;  %p1386_p7 = scmp.lt.s32.totalorder %s1380_s5, %s1380_s5 }
  0x30   :  { %p1387_p8 = por %p1386_p7, %p1385_p6 }
  0x32   :  { %p1388_p9 = pnand %p1387_p8, %p1381_p5 }
  0x34   :  { %1391 = shalt.err (!%p1388_p9)
}
  0x35   :  { %102 = dma.hbm_to_vmem [thread:$0]  %s1760_s9, 2048, %s97_s18, [#allocation12], %s1514_s20, %s1514_s20, %s1515_s21  }
  0x36   :  { %s1392_s26 = scalar_lea.hbm %s1751_s0, 256 }
  0x37   :  { %p1393_p10 = scmp.ne.s32.totalorder %s1751_s0, %s1392_s26  ;;  %p1396_p11 = scmp.lt.u32.totalorder %s1392_s26, %s1751_s0 }
  0x39   :  { %p1398_p12 = pnand %p1396_p11, %p1393_p10 }
  0x3b   :  { %1401 = shalt.err (!%p1398_p12)
}
  0x3c   :  { %s1402_s25 = scalar_lea.vmem %s1629_s22, 256  ;;  %p1407_p0 = scmp.lt.s32.totalorder %s1629_s22, %s1629_s22 }
  0x3d   :  { %p1403_p13 = scmp.ne.s32.totalorder %s1629_s22, %s1402_s25  ;;  %p1408_p1 = scmp.lt.s32.totalorder %s1402_s25, %s1402_s25 }
  0x3f   :  { %p1409_p2 = por %p1408_p1, %p1407_p0 }
  0x41   :  { %p1410_p3 = pnand %p1409_p2, %p1403_p13 }
  0x43   :  { %1413 = shalt.err (!%p1410_p3)
}
  0x44   :  { %34 = dma.hbm_to_vmem [thread:$0]  %s1751_s0, 256, %s1629_s22, [#allocation3], %s1514_s20, %s1514_s20, %s1515_s21  }
  0x45   :  { %s1518_s27 = smov [#allocation7]   ;;  %s1519_s30 = smov [#allocation10]  }
  0x46   :  { %s54_s29 = sshll.u32 %s1518_s27, 4  ;;  %s82_s14 = sshll.u32 %s1519_s30, 4  ;;  %s55_s29 = int_to_ptr.vmem [resolvable:$true] %s54_s29  ;;  %s1666_s14 = int_to_ptr.vmem [resolvable:$true] %s82_s14 }
  0x47   :  { %s1414_s15 = scalar_lea.hbm %s1754_s3, 2048 }
  0x48   :  { %p1415_p4 = scmp.ne.s32.totalorder %s1754_s3, %s1414_s15  ;;  %p1418_p5 = scmp.lt.u32.totalorder %s1414_s15, %s1754_s3 }
  0x4a   :  { %p1420_p6 = pnand %p1418_p5, %p1415_p4 }
  0x4c   :  { %1423 = shalt.err (!%p1420_p6)
}
  0x4d   :  { %s1424_s0 = scalar_lea.vmem %s55_s29, 2048  ;;  %p1429_p8 = scmp.lt.s32.totalorder %s55_s29, %s55_s29 }
  0x4e   :  { %p1425_p7 = scmp.ne.s32.totalorder %s55_s29, %s1424_s0  ;;  %p1430_p9 = scmp.lt.s32.totalorder %s1424_s0, %s1424_s0 }
  0x50   :  { %p1431_p10 = por %p1430_p9, %p1429_p8 }
  0x52   :  { %p1432_p11 = pnand %p1431_p10, %p1425_p7 }
  0x54   :  { %1435 = shalt.err (!%p1432_p11)
}
  0x55   :  { %60 = dma.hbm_to_vmem [thread:$0]  %s1754_s3, 2048, %s55_s29, [#allocation6], %s1514_s20, %s1514_s20, %s1515_s21  }
  0x56   :  { %s1436_s25 = scalar_lea.hbm %s1758_s7, 2048 }
  0x57   :  { %p1437_p12 = scmp.ne.s32.totalorder %s1758_s7, %s1436_s25  ;;  %p1440_p13 = scmp.lt.u32.totalorder %s1436_s25, %s1758_s7 }
  0x59   :  { %p1442_p0 = pnand %p1440_p13, %p1437_p12 }
  0x5b   :  { %1445 = shalt.err (!%p1442_p0)
}
  0x5c   :  { %s1446_s5 = scalar_lea.vmem %s1666_s14, 2048  ;;  %p1451_p2 = scmp.lt.s32.totalorder %s1666_s14, %s1666_s14 }
  0x5d   :  { %p1447_p1 = scmp.ne.s32.totalorder %s1666_s14, %s1446_s5  ;;  %p1452_p3 = scmp.lt.s32.totalorder %s1446_s5, %s1446_s5 }
  0x5f   :  { %p1453_p4 = por %p1452_p3, %p1451_p2 }
  0x61   :  { %p1454_p5 = pnand %p1453_p4, %p1447_p1 }
  0x63   :  { %1457 = shalt.err (!%p1454_p5)
}
  0x64   :  { %88 = dma.hbm_to_vmem [thread:$0]  %s1758_s7, 2048, %s1666_s14, [#allocation9], %s1514_s20, %s1514_s20, %s1515_s21  }
  0x65   :  { %s1520_s28 = smov [#allocation13]   ;;  %s1458_s26 = scalar_lea.hbm %s1762_s11, 2048 }
  0x66   :  { %s110_s15 = sshll.u32 %s1520_s28, 4  ;;  %p1459_p6 = scmp.ne.s32.totalorder %s1762_s11, %s1458_s26  ;;  %s111_s15 = int_to_ptr.vmem [resolvable:$true] %s110_s15 }
  0x67   :  { %p1462_p7 = scmp.lt.u32.totalorder %s1458_s26, %s1762_s11 }
  0x69   :  { %p1464_p8 = pnand %p1462_p7, %p1459_p6 }
  0x6b   :  { %1467 = shalt.err (!%p1464_p8)
}
  0x6c   :  { %s1468_s23 = scalar_lea.vmem %s111_s15, 2048  ;;  %p1473_p10 = scmp.lt.s32.totalorder %s111_s15, %s111_s15 }
  0x6d   :  { %p1469_p9 = scmp.ne.s32.totalorder %s111_s15, %s1468_s23  ;;  %p1474_p11 = scmp.lt.s32.totalorder %s1468_s23, %s1468_s23 }
  0x6f   :  { %p1475_p12 = por %p1474_p11, %p1473_p10 }
  0x71   :  { %p1476_p13 = pnand %p1475_p12, %p1469_p9 }
  0x73   :  { %1479 = shalt.err (!%p1476_p13)
}
  0x74   :  { %116 = dma.hbm_to_vmem [thread:$0]  %s1762_s11, 2048, %s111_s15, [#allocation12], %s1514_s20, %s1514_s20, %s1515_s21  }
  0x75   :  { %1502 = dma.done.wait [#allocation3], 256  }
  0x76   :  { %1503 = vsyncadd [#allocation3], 4294967040 }
  0x77   :  { %1504 = dma.done.wait [#allocation6], 4096  }
  0x78   :  { %1505 = vsyncadd [#allocation6], 4294963200 }
  0x79   :  { %1506 = dma.done.wait [#allocation9], 4096  }
  0x7a   :  { %1507 = vsyncadd [#allocation9], 4294963200 }
  0x7b   :  { %1508 = dma.done.wait [#allocation12], 4096  }
  0x7c   :  { %1509 = vsyncadd [#allocation12], 4294963200  ;;  %v142_v0 = vld [vmem:[#allocation5] sm:$0xff]  ;;  %v143_v1 = vld [vmem:[#allocation5 + $0x8] sm:$0xff] }
  0x7d   :  { %v144_v2 = vld [vmem:[#allocation5 + $0x10] sm:$0xff]  ;;  %v1100_v3 = vpack.c.bf16 %v143_v1, %v142_v0  ;;  %v145_v4 = vld [vmem:[#allocation5 + $0x18] sm:$0xff]  ;;  %v146_v6 = vld [vmem:[#allocation5 + $0x20] sm:$0xff] }
  0x7e   :  { %v1104_v5 = vpack.c.bf16 %v145_v4, %v144_v2  ;;  %v147_v7 = vld [vmem:[#allocation5 + $0x28] sm:$0xff]  ;;  %v148_v9 = vld [vmem:[#allocation5 + $0x30] sm:$0xff]  ;;  %v149_v10 = vld [vmem:[#allocation5 + $0x38] sm:$0xff] }
  0x7f   :  { %1101 = vmatprep.subr.bf16.mxu0 %v1100_v3  ;;  %v1108_v8 = vpack.c.bf16 %v147_v7, %v146_v6  ;;  %v140_v11 = vld [vmem:[#allocation2] sm:$0xff]  ;;  %v248_v12 = vld [vmem:[#allocation7] sm:$0xff]  ;;  %v249_v13 = vld [vmem:[#allocation7 + $0x8] sm:$0xff]  ;;  %v1112_v20 = vpack.c.bf16 %v149_v10, %v148_v9 }
  0x80   :  { %1103 = vmatpush3.bf16.msra.mxu0 %v1100_v3  ;;  %922 = vmatprep.mubr.f32.mxu0 %v140_v11  ;;  %v250_v14 = vld [vmem:[#allocation7 + $0x10] sm:$0xff]  ;;  %v1132_v15 = vpack.c.bf16 %v249_v13, %v248_v12  ;;  %v251_v16 = vld [vmem:[#allocation7 + $0x18] sm:$0xff]  ;;  %v252_v18 = vld [vmem:[#allocation7 + $0x20] sm:$0xff] }
  0x81   :  { %1105 = vmatprep.subr.bf16.mxu0 %v1104_v5  ;;  %v1136_v17 = vpack.c.bf16 %v251_v16, %v250_v14  ;;  %v253_v19 = vld [vmem:[#allocation7 + $0x28] sm:$0xff]  ;;  %v150_v21 = vld [vmem:[#allocation5 + $0x40] sm:$0xff]  ;;  %v152_v25 = vld [vmem:[#allocation5 + $0x50] sm:$0xff] }
  0x82   :  { %1133 = vmatprep.subr.bf16.mxu1 %v1132_v15  ;;  %v151_v22 = vld [vmem:[#allocation5 + $0x48] sm:$0xff]  ;;  %v1140_v23 = vpack.c.bf16 %v253_v19, %v252_v18  ;;  %v153_v26 = vld [vmem:[#allocation5 + $0x58] sm:$0xff]  ;;  %v154_v28 = vld [vmem:[#allocation5 + $0x60] sm:$0xff] }
  0x83   :  { %1135 = vmatpush3.bf16.msra.mxu1 %v1132_v15  ;;  %v1116_v24 = vpack.c.bf16 %v151_v22, %v150_v21  ;;  %v1120_v27 = vpack.c.bf16 %v153_v26, %v152_v25  ;;  %v155_v29 = vld [vmem:[#allocation5 + $0x68] sm:$0xff]  ;;  %v156_v31 = vld [vmem:[#allocation5 + $0x70] sm:$0xff]  ;;  %v157_v32 = vld [vmem:[#allocation5 + $0x78] sm:$0xff] }
  0x84   :  { %1107 = vmatpush3.bf16.msra.mxu0 %v1104_v5  ;;  %1137 = vmatprep.subr.bf16.mxu1 %v1136_v17  ;;  %v1124_v30 = vpack.c.bf16 %v155_v29, %v154_v28  ;;  %v1128_v33 = vpack.c.bf16 %v157_v32, %v156_v31  ;;  %v141_v34 = vld [vmem:[#allocation2 + $0x8] sm:$0xff]  ;;  %v254_v35 = vld [vmem:[#allocation7 + $0x30] sm:$0xff]  ;;  %v256_v38 = vld [vmem:[#allocation7 + $0x40] sm:$0xff] }
  0x85   :  { %1109 = vmatprep.subr.bf16.mxu0 %v1108_v8  ;;  %v255_v36 = vld [vmem:[#allocation7 + $0x38] sm:$0xff]  ;;  %v257_v39 = vld [vmem:[#allocation7 + $0x48] sm:$0xff]  ;;  %v258_v41 = vld [vmem:[#allocation7 + $0x50] sm:$0xff] }
  0x86   :  { %v1144_v37 = vpack.c.bf16 %v255_v36, %v254_v35  ;;  %v1148_v40 = vpack.c.bf16 %v257_v39, %v256_v38  ;;  %v259_v42 = vld [vmem:[#allocation7 + $0x58] sm:$0xff]  ;;  %v260_v44 = vld [vmem:[#allocation7 + $0x60] sm:$0xff]  ;;  %v261_v45 = vld [vmem:[#allocation7 + $0x68] sm:$0xff] }
  0x87   :  { %1139 = vmatpush3.bf16.msra.mxu1 %v1136_v17  ;;  %v1152_v43 = vpack.c.bf16 %v259_v42, %v258_v41  ;;  %v1156_v46 = vpack.c.bf16 %v261_v45, %v260_v44  ;;  %v262_v47 = vld [vmem:[#allocation7 + $0x70] sm:$0xff]  ;;  %v263_v48 = vld [vmem:[#allocation7 + $0x78] sm:$0xff]  ;;  %v348_v50 = vld [vmem:[#allocation8] sm:$0xff] }
  0x88   :  { %1111 = vmatpush3.bf16.msra.mxu0 %v1108_v8  ;;  %1141 = vmatprep.subr.bf16.mxu1 %v1140_v23  ;;  %v1160_v49 = vpack.c.bf16 %v263_v48, %v262_v47  ;;  %v349_v51 = vld [vmem:[#allocation8 + $0x8] sm:$0xff]  ;;  %v350_v52 = vld [vmem:[#allocation8 + $0x10] sm:$0xff]  ;;  %v351_v54 = vld [vmem:[#allocation8 + $0x18] sm:$0xff] }
  0x89   :  { %1113 = vmatprep.subr.bf16.mxu0 %v1112_v20  ;;  %v1164_v53 = vpack.c.bf16 %v349_v51, %v348_v50  ;;  %v1168_v55 = vpack.c.bf16 %v351_v54, %v350_v52  ;;  %v352_v56 = vld [vmem:[#allocation8 + $0x20] sm:$0xff]  ;;  %v353_v57 = vld [vmem:[#allocation8 + $0x28] sm:$0xff]  ;;  %v354_v59 = vld [vmem:[#allocation8 + $0x30] sm:$0xff] }
  0x8a   :  { %v1172_v58 = vpack.c.bf16 %v353_v57, %v352_v56  ;;  %v355_v60 = vld [vmem:[#allocation8 + $0x38] sm:$0xff]  ;;  %v776_v62 = vld [vmem:[%s1753_s2] ss:$0 sm:$0xff]  ;;  %v356_v11 = vld [vmem:[#allocation8 + $0x40] sm:$0xff] }
  0x8b   :  { %1143 = vmatpush3.bf16.msra.mxu1 %v1140_v23  ;;  %v1176_v61 = vpack.c.bf16 %v355_v60, %v354_v59  ;;  %v357_v12 = vld [vmem:[#allocation8 + $0x48] sm:$0xff]  ;;  %v358_v14 = vld [vmem:[#allocation8 + $0x50] sm:$0xff]  ;;  %v359_v15 = vld [vmem:[#allocation8 + $0x58] sm:$0xff] }
  0x8c   :  { %1115 = vmatpush3.bf16.msra.mxu0 %v1112_v20  ;;  %1145 = vmatprep.subr.bf16.mxu1 %v1144_v37  ;;  %v1180_v13 = vpack.c.bf16 %v357_v12, %v356_v11  ;;  %v1184_v16 = vpack.c.bf16 %v359_v15, %v358_v14  ;;  %v360_v17 = vld [vmem:[#allocation8 + $0x60] sm:$0xff]  ;;  %v361_v18 = vld [vmem:[#allocation8 + $0x68] sm:$0xff]  ;;  %v362_v19 = vld [vmem:[#allocation8 + $0x70] sm:$0xff] }
  0x8d   :  { %1117 = vmatprep.subr.bf16.mxu0 %v1116_v24  ;;  %v1188_v20 = vpack.c.bf16 %v361_v18, %v360_v17  ;;  %v363_v21 = vld [vmem:[#allocation8 + $0x78] sm:$0xff]  ;;  %v448_v23 = vld [vmem:[#allocation10] sm:$0xff]  ;;  %v450_v25 = vld [vmem:[#allocation10 + $0x10] sm:$0xff] }
  0x8e   :  { %v1192_v22 = vpack.c.bf16 %v363_v21, %v362_v19  ;;  %v452_v29 = vld [vmem:[#allocation10 + $0x20] sm:$0xff]  ;;  %v454_v32 = vld [vmem:[#allocation10 + $0x30] sm:$0xff]  ;;  %v463_v52 = vld [vmem:[#allocation10 + $0x78] sm:$0xff] }
  0x8f   :  { %1147 = vmatpush3.bf16.msra.mxu1 %v1144_v37  ;;  %v777_v35 = vld [vmem:[%s1755_s4] ss:$0 sm:$0xff]  ;;  %v456_v42 = vld [vmem:[#allocation10 + $0x40] sm:$0xff]  ;;  %v563_v19 = vld [vmem:[#allocation11 + $0x78] sm:$0xff] }
  0x90   :  { %1119 = vmatpush3.bf16.msra.mxu0 %v1116_v24  ;;  %1149 = vmatprep.subr.bf16.mxu1 %v1148_v40  ;;  %v449_v24 = vld [vmem:[#allocation10 + $0x8] sm:$0xff]  ;;  %v458_v45 = vld [vmem:[#allocation10 + $0x50] sm:$0xff]  ;;  %v460_v48 = vld [vmem:[#allocation10 + $0x60] sm:$0xff] }
  0x91   :  { %1121 = vmatprep.subr.bf16.mxu0 %v1120_v27  ;;  %v1196_v26 = vpack.c.bf16 %v449_v24, %v448_v23  ;;  %v462_v50 = vld [vmem:[#allocation10 + $0x70] sm:$0xff]  ;;  %v548_v54 = vld [vmem:[#allocation11] sm:$0xff] }
  0x92   :  { %v550_v56 = vld [vmem:[#allocation11 + $0x10] sm:$0xff]  ;;  %v552_v60 = vld [vmem:[#allocation11 + $0x20] sm:$0xff] }
  0x93   :  { %1151 = vmatpush3.bf16.msra.mxu1 %v1148_v40  ;;  %v558_v12 = vld [vmem:[#allocation11 + $0x50] sm:$0xff]  ;;  %v560_v15 = vld [vmem:[#allocation11 + $0x60] sm:$0xff] }
  0x94   :  { %1123 = vmatpush3.bf16.msra.mxu0 %v1120_v27  ;;  %1153 = vmatprep.subr.bf16.mxu1 %v1152_v43  ;;  %v451_v27 = vld [vmem:[#allocation10 + $0x18] sm:$0xff]  ;;  %v562_v17 = vld [vmem:[#allocation11 + $0x70] sm:$0xff]  ;;  %v648_v21 = vld [vmem:[#allocation13] sm:$0xff] }
  0x95   :  { %1125 = vmatprep.subr.bf16.mxu0 %v1124_v30  ;;  %v1200_v28 = vpack.c.bf16 %v451_v27, %v450_v25  ;;  %v650_v23 = vld [vmem:[#allocation13 + $0x10] sm:$0xff]  ;;  %v651_v25 = vld [vmem:[#allocation13 + $0x18] sm:$0xff]  ;;  %v652_v27 = vld [vmem:[#allocation13 + $0x20] sm:$0xff] }
  0x97   :  { %1155 = vmatpush3.bf16.msra.mxu1 %v1152_v43  ;;  %v457_v43 = vld [vmem:[#allocation10 + $0x48] sm:$0xff] }
  0x98   :  { %1127 = vmatpush3.bf16.msra.mxu0 %v1124_v30  ;;  %1157 = vmatprep.subr.bf16.mxu1 %v1156_v46  ;;  %v453_v30 = vld [vmem:[#allocation10 + $0x28] sm:$0xff]  ;;  %v1212_v44 = vpack.c.bf16 %v457_v43, %v456_v42  ;;  %v658_v43 = vld [vmem:[#allocation13 + $0x50] sm:$0xff] }
  0x99   :  { %1129 = vmatprep.subr.bf16.mxu0 %v1128_v33  ;;  %v1204_v31 = vpack.c.bf16 %v453_v30, %v452_v29  ;;  %v654_v30 = vld [vmem:[#allocation13 + $0x30] sm:$0xff] }
  0x9b   :  { %1159 = vmatpush3.bf16.msra.mxu1 %v1156_v46  ;;  %v459_v46 = vld [vmem:[#allocation10 + $0x58] sm:$0xff] }
  0x9c   :  { %1131 = vmatpush3.bf16.msra.mxu0 %v1128_v33  ;;  %1161 = vmatprep.subr.bf16.mxu1 %v1160_v49  ;;  %v455_v33 = vld [vmem:[#allocation10 + $0x38] sm:$0xff]  ;;  %v1216_v47 = vpack.c.bf16 %v459_v46, %v458_v45  ;;  %v660_v46 = vld [vmem:[#allocation13 + $0x60] sm:$0xff] }
  0x9d   :  { %1165 = vmatprep.subr.bf16.mxu0 %v1164_v53 }
  0x9f   :  { %923 = vmatmul.mubr.f32.vlgmr.msra.gmra.mrb[0].mxu0 %v141_v34  ;;  %1163 = vmatpush3.bf16.msra.mxu1 %v1160_v49  ;;  %v1208_v34 = vpack.c.bf16 %v455_v33, %v454_v32  ;;  %v461_v49 = vld [vmem:[#allocation10 + $0x68] sm:$0xff]  ;;  %v779_v33 = vld [vmem:[%s1759_s8] ss:$0 sm:$0xff] }
  0xa0   :  { %1167 = vmatpush3.bf16.msra.mxu0 %v1164_v53  ;;  %1197 = vmatprep.subr.bf16.mxu1 %v1196_v26  ;;  %v1220_v51 = vpack.c.bf16 %v461_v49, %v460_v48  ;;  %v1224_v53 = vpack.c.bf16 %v463_v52, %v462_v50  ;;  %v662_v48 = vld [vmem:[#allocation13 + $0x70] sm:$0xff]  ;;  %v663_v50 = vld [vmem:[#allocation13 + $0x78] sm:$0xff] }
  0xa1   :  { %1169 = vmatprep.subr.bf16.mxu0 %v1168_v55  ;;  %v780_v52 = vld [vmem:[%s1761_s10] ss:$0 sm:$0xff]  ;;  %s1521_s10 = smov [#allocation14]  }
  0xa2   :  { %s761_s3 = sshll.u32 %s1521_s10, 4  ;;  %s762_s3 = int_to_ptr.vmem [resolvable:$true] %s761_s3 }
  0xa3   :  { %p1485_p1 = scmp.lt.s32.totalorder %s762_s3, %s762_s3 }
  0xa4   :  { %1171 = vmatpush3.bf16.msra.mxu0 %v1168_v55  ;;  %v549_v55 = vld [vmem:[#allocation11 + $0x8] sm:$0xff] }
  0xa5   :  { %1173 = vmatprep.subr.bf16.mxu0 %v1172_v58  ;;  %v1228_v57 = vpack.c.bf16 %v549_v55, %v548_v54 }
  0xa8   :  { %1175 = vmatpush3.bf16.msra.mxu0 %v1172_v58  ;;  %v551_v58 = vld [vmem:[#allocation11 + $0x18] sm:$0xff] }
  0xa9   :  { %1177 = vmatprep.subr.bf16.mxu0 %v1176_v61  ;;  %v1232_v59 = vpack.c.bf16 %v551_v58, %v550_v56 }
  0xac   :  { %1179 = vmatpush3.bf16.msra.mxu0 %v1176_v61  ;;  %v553_v61 = vld [vmem:[#allocation11 + $0x28] sm:$0xff] }
  0xad   :  { %1181 = vmatprep.subr.bf16.mxu0 %v1180_v13 }
  0xb0   :  { %1183 = vmatpush3.bf16.msra.mxu0 %v1180_v13  ;;  %v559_v13 = vld [vmem:[#allocation11 + $0x58] sm:$0xff] }
  0xb1   :  { %1185 = vmatprep.subr.bf16.mxu0 %v1184_v16  ;;  %v1248_v14 = vpack.c.bf16 %v559_v13, %v558_v12 }
  0xb4   :  { %1187 = vmatpush3.bf16.msra.mxu0 %v1184_v16  ;;  %v561_v16 = vld [vmem:[#allocation11 + $0x68] sm:$0xff] }
  0xb5   :  { %1189 = vmatprep.subr.bf16.mxu0 %v1188_v20  ;;  %v1252_v18 = vpack.c.bf16 %v561_v16, %v560_v15 }
  0xb8   :  { %1191 = vmatpush3.bf16.msra.mxu0 %v1188_v20  ;;  %v1256_v20 = vpack.c.bf16 %v563_v19, %v562_v17 }
  0xb9   :  { %1193 = vmatprep.subr.bf16.mxu0 %v1192_v22 }
  0xbc   :  { %1195 = vmatpush3.bf16.msra.mxu0 %v1192_v22  ;;  %v649_v22 = vld [vmem:[#allocation13 + $0x8] sm:$0xff] }
  0xbd   :  { %1229 = vmatprep.subr.bf16.mxu0 %v1228_v57  ;;  %v1260_v24 = vpack.c.bf16 %v649_v22, %v648_v21 }
 0x172   :  { %v924_v63 = vpop.f32.mrb[0].mxu0 }
 0x173   :  { %v237_v0 = vadd.f32 %v924_v63, %v776_v62  ;;  %v231_v1 = vpop.f32.mrb[1].mxu0  ;;  %v554_v63 = vld [vmem:[#allocation11 + $0x30] sm:$0xff] }
 0x174   :  { %v232_v2 = vadd.f32 %v776_v62, %v231_v1  ;;  %v1236_v62 = vpack.c.bf16 %v553_v61, %v552_v60 }
 0x175   :  { %v241_v3 = vmul.f32 0.5, %v237_v0  ;;  %v555_v0 = vld [vmem:[#allocation11 + $0x38] sm:$0xff] }
 0x176   :  { %v240_v4 = vmul.f32 0.5, %v232_v2  ;;  %v1240_v1 = vpack.c.bf16 %v555_v0, %v554_v63  ;;  %v778_v2 = vld [vmem:[%s1757_s6] ss:$0 sm:$0xff] }
 0x177   :  { %1302 = vtanh.f32 %v241_v3 }
 0x178   :  { %1304 = vtanh.f32 %v240_v4 }
 0x181   :  { %v1303_v5 = vpop.eup %1302 }
 0x182   :  { %v1305_v6 = vpop.eup %1304  ;;  %v245_v7 = vadd.f32 1.0, %v1303_v5 }
 0x183   :  { %v244_v8 = vadd.f32 1.0, %v1305_v6 }
 0x184   :  { %v247_v10 = vmul.f32 0.5, %v245_v7 }
 0x185   :  { %v246_v9 = vmul.f32 0.5, %v244_v8 }
 0x187   :  { %957 = vmatprep.mubr.f32.mxu1 %v246_v9  ;;  %v556_v9 = vld [vmem:[#allocation11 + $0x40] sm:$0xff] }
 0x188   :  { %958 = vmatmul.mubr.f32.vlgmr.msra.gmra.mrb[0].mxu1 %v247_v10  ;;  %v557_v10 = vld [vmem:[#allocation11 + $0x48] sm:$0xff] }
 0x189   :  { %1199 = vmatpush3.bf16.msra.mxu1 %v1196_v26  ;;  %v1244_v11 = vpack.c.bf16 %v557_v10, %v556_v9  ;;  %v1264_v26 = vpack.c.bf16 %v651_v25, %v650_v23 }
 0x18a   :  { %1201 = vmatprep.subr.bf16.mxu1 %v1200_v28 }
 0x18d   :  { %1203 = vmatpush3.bf16.msra.mxu1 %v1200_v28  ;;  %v653_v28 = vld [vmem:[#allocation13 + $0x28] sm:$0xff] }
 0x18e   :  { %1205 = vmatprep.subr.bf16.mxu1 %v1204_v31  ;;  %v1268_v29 = vpack.c.bf16 %v653_v28, %v652_v27 }
 0x191   :  { %1207 = vmatpush3.bf16.msra.mxu1 %v1204_v31  ;;  %v655_v31 = vld [vmem:[#allocation13 + $0x38] sm:$0xff] }
 0x192   :  { %1209 = vmatprep.subr.bf16.mxu1 %v1208_v34  ;;  %v1272_v32 = vpack.c.bf16 %v655_v31, %v654_v30 }
 0x195   :  { %1211 = vmatpush3.bf16.msra.mxu1 %v1208_v34 }
 0x196   :  { %1213 = vmatprep.subr.bf16.mxu1 %v1212_v44 }
 0x199   :  { %1215 = vmatpush3.bf16.msra.mxu1 %v1212_v44  ;;  %v659_v44 = vld [vmem:[#allocation13 + $0x58] sm:$0xff] }
 0x19a   :  { %1217 = vmatprep.subr.bf16.mxu1 %v1216_v47  ;;  %v1280_v45 = vpack.c.bf16 %v659_v44, %v658_v43 }
 0x19d   :  { %1219 = vmatpush3.bf16.msra.mxu1 %v1216_v47  ;;  %v661_v47 = vld [vmem:[#allocation13 + $0x68] sm:$0xff] }
 0x19e   :  { %1221 = vmatprep.subr.bf16.mxu1 %v1220_v51  ;;  %v1284_v49 = vpack.c.bf16 %v661_v47, %v660_v46 }
 0x1a1   :  { %1223 = vmatpush3.bf16.msra.mxu1 %v1220_v51  ;;  %v1288_v51 = vpack.c.bf16 %v663_v50, %v662_v48 }
 0x1a2   :  { %1225 = vmatprep.subr.bf16.mxu1 %v1224_v53 }
 0x1a5   :  { %1227 = vmatpush3.bf16.msra.mxu1 %v1224_v53 }
 0x1a6   :  { %1261 = vmatprep.subr.bf16.mxu1 %v1260_v24 }
 0x25b   :  { %v959_v36 = vpop.f32.mrb[0].mxu1 }
 0x25c   :  { %v343_v37 = vadd.f32 %v959_v36, %v777_v35  ;;  %v337_v38 = vpop.f32.mrb[1].mxu1 }
 0x25d   :  { %v338_v39 = vadd.f32 %v777_v35, %v337_v38 }
 0x25f   :  { %1306 = vtanh.f32 %v338_v39 }
 0x260   :  { %1308 = vtanh.f32 %v343_v37 }
 0x269   :  { %v1307_v40 = vpop.eup %1306 }
 0x26a   :  { %v1309_v41 = vpop.eup %1308  ;;  %992 = vmatprep.mubr.f32.mxu0 %v1307_v40  ;;  %v656_v40 = vld [vmem:[#allocation13 + $0x40] sm:$0xff] }
 0x26b   :  { %993 = vmatmul.mubr.f32.vlgmr.msra.gmra.mrb[2].mxu0 %v1309_v41  ;;  %v657_v41 = vld [vmem:[#allocation13 + $0x48] sm:$0xff] }
 0x26c   :  { %1231 = vmatpush3.bf16.msra.mxu0 %v1228_v57  ;;  %v1276_v42 = vpack.c.bf16 %v657_v41, %v656_v40 }
 0x26d   :  { %1233 = vmatprep.subr.bf16.mxu0 %v1232_v59 }
 0x270   :  { %1235 = vmatpush3.bf16.msra.mxu0 %v1232_v59  ;;  %v781_v59 = vld [vmem:[%s1763_s12] ss:$0 sm:$0xff]  ;;  %s1480_s12 = scalar_lea.vmem %s762_s3, 256 }
 0x271   :  { %1237 = vmatprep.subr.bf16.mxu0 %v1236_v62  ;;  %p1481_p0 = scmp.ne.s32.totalorder %s762_s3, %s1480_s12  ;;  %p1486_p2 = scmp.lt.s32.totalorder %s1480_s12, %s1480_s12 }
 0x273   :  { %p1487_p3 = por %p1486_p2, %p1485_p1 }
 0x274   :  { %1239 = vmatpush3.bf16.msra.mxu0 %v1236_v62 }
 0x275   :  { %1241 = vmatprep.subr.bf16.mxu0 %v1240_v1  ;;  %p1488_p4 = pnand %p1487_p3, %p1481_p0 }
 0x278   :  { %1243 = vmatpush3.bf16.msra.mxu0 %v1240_v1 }
 0x279   :  { %1245 = vmatprep.subr.bf16.mxu0 %v1244_v11 }
 0x27c   :  { %1247 = vmatpush3.bf16.msra.mxu0 %v1244_v11 }
 0x27d   :  { %1249 = vmatprep.subr.bf16.mxu0 %v1248_v14 }
 0x280   :  { %1251 = vmatpush3.bf16.msra.mxu0 %v1248_v14 }
 0x281   :  { %1253 = vmatprep.subr.bf16.mxu0 %v1252_v18 }
 0x284   :  { %1255 = vmatpush3.bf16.msra.mxu0 %v1252_v18 }
 0x285   :  { %1257 = vmatprep.subr.bf16.mxu0 %v1256_v20 }
 0x288   :  { %1259 = vmatpush3.bf16.msra.mxu0 %v1256_v20 }
 0x33e   :  { %v994_v3 = vpop.f32.mrb[2].mxu0 }
 0x33f   :  { %v443_v4 = vadd.f32 %v994_v3, %v778_v2  ;;  %v437_v5 = vpop.f32.mrb[3].mxu0 }
 0x340   :  { %v438_v6 = vadd.f32 %v778_v2, %v437_v5 }
 0x342   :  { %1310 = vtanh.f32 %v438_v6 }
 0x343   :  { %1312 = vtanh.f32 %v443_v4 }
 0x34c   :  { %v1311_v7 = vpop.eup %1310 }
 0x34d   :  { %v1313_v8 = vpop.eup %1312  ;;  %1027 = vmatprep.mubr.f32.mxu1 %v1311_v7 }
 0x34e   :  { %1028 = vmatmul.mubr.f32.vlgmr.msra.gmra.mrb[2].mxu1 %v1313_v8 }
 0x34f   :  { %1263 = vmatpush3.bf16.msra.mxu1 %v1260_v24 }
 0x350   :  { %1265 = vmatprep.subr.bf16.mxu1 %v1264_v26 }
 0x353   :  { %1267 = vmatpush3.bf16.msra.mxu1 %v1264_v26 }
 0x354   :  { %1269 = vmatprep.subr.bf16.mxu1 %v1268_v29 }
 0x357   :  { %1271 = vmatpush3.bf16.msra.mxu1 %v1268_v29 }
 0x358   :  { %1273 = vmatprep.subr.bf16.mxu1 %v1272_v32 }
 0x35b   :  { %1275 = vmatpush3.bf16.msra.mxu1 %v1272_v32 }
 0x35c   :  { %1277 = vmatprep.subr.bf16.mxu1 %v1276_v42 }
 0x35f   :  { %1279 = vmatpush3.bf16.msra.mxu1 %v1276_v42 }
 0x360   :  { %1281 = vmatprep.subr.bf16.mxu1 %v1280_v45 }
 0x363   :  { %1283 = vmatpush3.bf16.msra.mxu1 %v1280_v45 }
 0x364   :  { %1285 = vmatprep.subr.bf16.mxu1 %v1284_v49 }
 0x367   :  { %1287 = vmatpush3.bf16.msra.mxu1 %v1284_v49 }
 0x368   :  { %1289 = vmatprep.subr.bf16.mxu1 %v1288_v51 }
 0x36b   :  { %1291 = vmatpush3.bf16.msra.mxu1 %v1288_v51 }
 0x421   :  { %v1029_v34 = vpop.f32.mrb[2].mxu1 }
 0x422   :  { %v543_v35 = vadd.f32 %v1029_v34, %v779_v33  ;;  %v537_v36 = vpop.f32.mrb[3].mxu1 }
 0x423   :  { %v538_v37 = vadd.f32 %v779_v33, %v537_v36 }
 0x425   :  { %1314 = vtanh.f32 %v538_v37 }
 0x426   :  { %1316 = vtanh.f32 %v543_v35 }
 0x42f   :  { %v1315_v38 = vpop.eup %1314 }
 0x430   :  { %v1317_v39 = vpop.eup %1316  ;;  %1062 = vmatprep.mubr.f32.mxu0 %v1315_v38 }
 0x431   :  { %1063 = vmatmul.mubr.f32.vlgmr.msra.gmra.mrb[4].mxu0 %v1317_v39 }
 0x504   :  { %v1064_v53 = vpop.f32.mrb[4].mxu0 }
 0x505   :  { %v643_v54 = vadd.f32 %v1064_v53, %v780_v52  ;;  %v637_v55 = vpop.f32.mrb[5].mxu0 }
 0x506   :  { %v638_v56 = vadd.f32 %v780_v52, %v637_v55 }
 0x508   :  { %1318 = vtanh.f32 %v638_v56 }
 0x509   :  { %1320 = vtanh.f32 %v643_v54 }
 0x512   :  { %v1319_v57 = vpop.eup %1318 }
 0x513   :  { %v1321_v58 = vpop.eup %1320  ;;  %1097 = vmatprep.mubr.f32.mxu1 %v1319_v57 }
 0x514   :  { %1098 = vmatmul.mubr.f32.vlgmr.msra.gmra.mrb[4].mxu1 %v1321_v58 }
 0x5e7   :  { %v1099_v60 = vpop.f32.mrb[4].mxu1 }
 0x5e8   :  { %v743_v61 = vadd.f32 %v1099_v60, %v781_v59  ;;  %v737_v62 = vpop.f32.mrb[5].mxu1 }
 0x5e9   :  { %v738_v63 = vadd.f32 %v781_v59, %v737_v62 }
 0x5ea   :  { %v747_v0 = vmul.f32 0.5, %v743_v61 }
 0x5eb   :  { %v746_v1 = vmul.f32 0.5, %v738_v63 }
 0x5ec   :  { %1322 = vtanh.f32 %v747_v0 }
 0x5ed   :  { %1324 = vtanh.f32 %v746_v1 }
 0x5f6   :  { %v1323_v2 = vpop.eup %1322 }
 0x5f7   :  { %v1325_v3 = vpop.eup %1324  ;;  %v751_v4 = vadd.f32 1.0, %v1323_v2 }
 0x5f8   :  { %v750_v5 = vadd.f32 1.0, %v1325_v3 }
 0x5f9   :  { %v753_v6 = vmul.f32 0.5, %v751_v4 }
 0x5fa   :  { %v752_v7 = vmul.f32 0.5, %v750_v5 }
 0x5fb   :  { %755 = vst [vmem:[#allocation14 + $0x8] sm:$0xff] %v753_v6 }
 0x5fc   :  { %754 = vst [vmem:[#allocation14] sm:$0xff] %v752_v7 }
 0x5fd   :  { %1491 = shalt.err (!%p1488_p4)
}
 0x5fe   :  { %s1492_s15 = scalar_lea.hbm %s1764_s13, 256 }
 0x5ff   :  { %p1493_p5 = scmp.ne.s32.totalorder %s1764_s13, %s1492_s15  ;;  %p1496_p6 = scmp.lt.u32.totalorder %s1492_s15, %s1764_s13 }
 0x601   :  { %p1498_p7 = pnand %p1496_p6, %p1493_p5 }
 0x603   :  { %1501 = shalt.err (!%p1498_p7)
}
 0x604   :  { %767 = dma.vmem_to_hbm [thread:$0]  %s762_s3, 256, %s1764_s13, [#allocation4], %s1514_s20, %s1514_s20, %s1515_s21  }
 0x605   :  { %1510 = dma.done.wait [#allocation4], 256  }
 0x606   :  { %1511 = vsyncadd [#allocation4], 4294967040 }
 0x607   :  { %771 = vsyncpa [#allocation3], 1 }
 0x608   :  { %772 = vsyncpa [#allocation6], 1 }
 0x609   :  { %773 = vsyncpa [#allocation9], 1 }
 0x60a   :  { %774 = vsyncpa [#allocation12], 1 }
 0x60b   :  { %775 = vsyncpa [#allocation4], 1 }

</bundles_post_ra>
